<compile_context>
chip_gen: v7x
topology: tpu7x:2x2x1
jax: 0.10.0
libtpu: 0.0.40
codegen_flags: <defaults>
</compile_context>

<pallas_src>
import jax
import jax.numpy as jnp
from jax.experimental import pallas as pl
from jax.experimental.pallas import tpu as pltpu


LANE = 128
TM_MAX = 1024                      # node-axis tile upper bound
VMEM_BUDGET = 24 * 1024 * 1024     # headroom under the 32 MiB scoped limit
                                   # (v7x has 64 MiB physical / 32 MiB scoped VMEM)


def _round_up(x, m):
    return (x + m - 1) // m * m


def _pick_tm(n, d_total, e):
    """Node-axis tile: multiple of 8 (f32 sublane quantum), capped by the VMEM budget
    and TM_MAX, and chosen so the 'parallel' N axis has >= 2 blocks whenever N permits
    (v7x megacore sharding needs >= 2 tiles on the parallel axis)."""
    if n <= 16:
        return n  # full-extent block; (8,128) rule satisfied by "equals full dim"
    # per-row bytes: double-buffered f32 X blocks + double-buffered f32 out block
    bytes_per_row = 2 * d_total * 4 + 2 * e * 4
    tm_cap = max(8, (VMEM_BUDGET // max(bytes_per_row, 1)) // 8 * 8)
    two_tiles = _round_up(pl.cdiv(n, 2), 8)
    return max(8, min(TM_MAX, tm_cap, two_tiles))


# ---------------------------------------------------------------------------
# One fused pallas_call per node type:
#   out[i-tile] = sum_k  X_k[i-tile, :] @ W_k        (W_k pre-scaled by 1/K)
# 1-D grid over N only; every D_k is consumed in full per grid step, so there is no
# reduction grid, no zero-init and no accumulate pass — the result is stored once.
# ---------------------------------------------------------------------------
def _build_fused_call(n, dims, e):
    k_count = len(dims)
    tm = _pick_tm(n, sum(dims), e)
    grid = (pl.cdiv(n, tm),)

    def kernel(*refs):
        x_refs = refs[:k_count]
        w_refs = refs[k_count:2 * k_count]
        o_ref = refs[2 * k_count]
        # f32 feature tile -> bf16 on the VPU, MXU matmul with f32 accumulation.
        acc = jnp.dot(
            x_refs[0][...].astype(jnp.bfloat16), w_refs[0][...],
            preferred_element_type=jnp.float32)
        for k in range(1, k_count):   # static Python loop over the K metapaths
            acc = acc + jnp.dot(
                x_refs[k][...].astype(jnp.bfloat16), w_refs[k][...],
                preferred_element_type=jnp.float32)
        o_ref[...] = acc   # direct store; no zero-init / += pass

    in_specs = (
        # X_k: tiled over N; last dim is the FULL feature width (legal even when
        # d_k % 128 != 0).  Ragged last N tile is handled by Pallas masked stores —
        # garbage rows read there never reach HBM.
        [pl.BlockSpec((tm, d), lambda i: (i, 0)) for d in dims]
        # W_k: constant block index -> DMA'd once, resident across all N tiles.
        + [pl.BlockSpec((d, e), lambda i: (0, 0)) for d in dims]
    )
    out_specs = pl.BlockSpec((tm, e), lambda i: (i, 0))   # lane-dense (E = 128)

    call = pl.pallas_call(
        kernel,
        out_shape=jax.ShapeDtypeStruct((n, e), jnp.float32),
        grid_spec=pltpu.PrefetchScalarGridSpec(
            num_scalar_prefetch=0,
            grid=grid,
            in_specs=in_specs,
            out_specs=out_specs,
        ),
        compiler_params=pltpu.CompilerParams(
            dimension_semantics=("parallel",),
            vmem_limit_bytes=32 * 1024 * 1024,   # v5e default scoped VMEM is 16 MiB
        ),
    )
    return jax.jit(call)


# ---------------------------------------------------------------------------
# Thin JAX wrapper mirroring SubMetapathAggr (neighbor_aggr_calc == 'basic')
# ---------------------------------------------------------------------------
class SubMetapathAggrPallas:
    def __init__(self, cfg, ntype_feature, metapath_name, key):
        self.cfg = cfg
        self.ntypes = list(ntype_feature.keys())
        self.ntype_feature = ntype_feature
        self.metapath_name = metapath_name
        e = cfg["embed_size"]
        self._embed_size = e

        # submetapath_embeding parameters, uniform(-0.5, 0.5) like reset_parameters().
        self.submetapath_embeding = {}
        names_dims = []
        for ntype, metapaths in metapath_name.items():
            names_dims.append((ntype, ntype_feature[ntype].shape[-1]))
            for mp in metapaths:
                names_dims.append((mp, ntype_feature[mp[-1]].shape[-1]))
        subkeys = jax.random.split(key, len(names_dims))
        for (name, d_in), sk in zip(names_dims, subkeys):
            self.submetapath_embeding[name] = jax.random.uniform(
                sk, (d_in, e), dtype=jnp.float32, minval=-0.5, maxval=0.5
            )

        # Per node type: ordered name list, feature widths, and the matching
        # 1/K-pre-scaled bf16 weight slices (mean over K folded into W, done once).
        self._names = {}
        self._dims = {}
        self._w_bf16 = {}
        for ntype, metapaths in metapath_name.items():
            names = [ntype] + list(metapaths)
            inv_k = 1.0 / float(len(names))
            self._names[ntype] = names
            self._dims[ntype] = tuple(
                self.submetapath_embeding[nm].shape[0] for nm in names
            )
            self._w_bf16[ntype] = [
                (self.submetapath_embeding[nm] * inv_k).astype(jnp.bfloat16)
                for nm in names
            ]

        self._call_cache = {}  # (ntype, n) -> jitted fused pallas callable

        # TODO(synk): cfg['input_drop']=0.0 / eval mode -> input dropout is identity;
        # training-mode dropout would use pltpu.prng_* inside the kernel.
        # NOTE: self.n_lin of the PyTorch module is never used in forward(); omitted.

    def _fused_call(self, ntype, n):
        key = (ntype, n)
        if key not in self._call_cache:
            self._call_cache[key] = _build_fused_call(
                n, self._dims[ntype], self._embed_size
            )
        return self._call_cache[key]

    def calc_submetapath_semantic_fusion_feature(
        self, neighbor_aggr_feature_per_metapath
    ):
        feature_dict = {}
        for ntype in self.ntypes:
            feats = [
                neighbor_aggr_feature_per_metapath[nm] for nm in self._names[ntype]
            ]
            n = feats[0].shape[0]
            call = self._fused_call(ntype, n)
            feature_dict[ntype] = call(*feats, *self._w_bf16[ntype])
        # TODO(synk): a grouped single pallas_call over all node types (scalar-prefetch
        # row-offset/group-id table, MoE-style) would remove the per-ntype launch
        # overhead; kept per-ntype here because K and the per-k feature widths differ
        # per node type.
        return feature_dict

    def forward(self, neighbor_aggr_feature_per_metapath):
        # TODO(synk): hg_propagate_feat_dgl (DGL sparse heterograph mean message
        # passing over etypes/hops) has no clean Pallas equivalent without an explicit
        # graph; forward here returns the semantic-fusion features.
        return self.calc_submetapath_semantic_fusion_feature(
            neighbor_aggr_feature_per_metapath
        )


# ---------------------------------------------------------------------------
# References (pure JAX) for correctness check
# ---------------------------------------------------------------------------
def reference_fusion_f32(module, feats):
    """Exact f32 semantics of the PyTorch module (stack + mean)."""
    out = {}
    for ntype in module.ntypes:
        names = module._names[ntype]
        embedded = [feats[nm] @ module.submetapath_embeding[nm] for nm in names]
        out[ntype] = jnp.mean(jnp.stack(embedded), axis=0)
    return out


def reference_fusion_bf16(module, feats):
    """Same math at the kernel's precision (bf16 inputs, 1/K pre-scaled bf16 weights,
    f32 accumulation) — for a tight structural-correctness check."""
    out = {}
    for ntype in module.ntypes:
        names = module._names[ntype]
        inv_k = 1.0 / float(len(names))
        acc = None
        for nm in names:
            x = feats[nm].astype(jnp.bfloat16).astype(jnp.float32)
            w = (
                (module.submetapath_embeding[nm] * inv_k)
                .astype(jnp.bfloat16)
                .astype(jnp.float32)
            )
            t = x @ w
            acc = t if acc is None else acc + t
        out[ntype] = acc
    return out


if __name__ == "__main__":
    key = jax.random.PRNGKey(0)
    cfg = {
        "embed_size": 128,  # multiple of 128 -> lane-dense output stores
        "input_drop": 0.0,
        "neighbor_aggr_calc": "basic",
        "num_hop": 2,
        "tgt_type": "P",
    }

    # Synthetic heterogeneous node features: {ntype: (num_nodes, feat_dim)}
    k_feat = jax.random.split(key, 8)
    ntype_feature = {
        "P": jax.random.normal(k_feat[0], (64, 64), dtype=jnp.float32),
        "A": jax.random.normal(k_feat[1], (48, 32), dtype=jnp.float32),
    }
    metapath_name = {"P": ("PA", "PAP"), "A": ("AP",)}

    # neighbor_aggr_feature_per_metapath: keyed by ntype and by metapath;
    # metapath features live on the start-type's nodes with the *last* type's feat dim.
    neighbor_aggr_feature_per_metapath = {
        "P": ntype_feature["P"],
        "A": ntype_feature["A"],
        "PA": jax.random.normal(k_feat[2], (64, 32), dtype=jnp.float32),
        "PAP": jax.random.normal(k_feat[3], (64, 64), dtype=jnp.float32),
        "AP": jax.random.normal(k_feat[4], (48, 64), dtype=jnp.float32),
    }

    module = SubMetapathAggrPallas(cfg, ntype_feature, metapath_name, k_feat[5])

    out = module.forward(neighbor_aggr_feature_per_metapath)
    out = {k: jax.block_until_ready(v) for k, v in out.items()}

    ref_exact = reference_fusion_bf16(module, neighbor_aggr_feature_per_metapath)
    ref_f32 = reference_fusion_f32(module, neighbor_aggr_feature_per_metapath)
    for k in out:
        assert out[k].shape == (
            neighbor_aggr_feature_per_metapath[k].shape[0],
            cfg["embed_size"],
        ), (k, out[k].shape)
        assert out[k].dtype == jnp.float32
        # Tight check against a reference with the kernel's exact input precision.
        assert jnp.allclose(out[k], ref_exact[k], atol=2e-3, rtol=2e-3), k
        # Loose check against the pure-f32 module semantics (bf16 rounding only).
        assert jnp.allclose(out[k], ref_f32[k], atol=8e-2, rtol=5e-2), k

    print("KERNEL_OK")
</pallas_src>

<mosaic_0001>
module attributes {stable_mosaic.version = 11 : i64} {
  func.func @kernel(%arg0: i32, %arg1: memref<32x64xf32, #tpu.memory_space<vmem>>, %arg2: memref<32x32xf32, #tpu.memory_space<vmem>>, %arg3: memref<32x64xf32, #tpu.memory_space<vmem>>, %arg4: memref<64x128xbf16, #tpu.memory_space<vmem>>, %arg5: memref<32x128xbf16, #tpu.memory_space<vmem>>, %arg6: memref<64x128xbf16, #tpu.memory_space<vmem>>, %arg7: memref<32x128xf32, #tpu.memory_space<vmem>>) attributes {dimension_semantics = [#tpu.dimension_semantics<parallel>], iteration_bounds = array<i64: 2>, scalar_prefetch = 0 : i64, scratch_operands = 0 : i64, tpu.core_type = #tpu.core_type<tc>, window_params = [{transform_indices = @transform_0, window_bounds = array<i64: 32, 64>}, {transform_indices = @transform_1, window_bounds = array<i64: 32, 32>}, {transform_indices = @transform_2, window_bounds = array<i64: 32, 64>}, {pipeline_mode = #tpu.pipeline_mode<synchronous>, transform_indices = @transform_3, window_bounds = array<i64: 64, 128>}, {pipeline_mode = #tpu.pipeline_mode<synchronous>, transform_indices = @transform_4, window_bounds = array<i64: 32, 128>}, {pipeline_mode = #tpu.pipeline_mode<synchronous>, transform_indices = @transform_5, window_bounds = array<i64: 64, 128>}, {transform_indices = @transform_6, window_bounds = array<i64: 32, 128>}]} {
    %c0 = arith.constant 0 : index
    %c0_0 = arith.constant 0 : index
    %0 = vector.load %arg1[%c0, %c0_0] : memref<32x64xf32, #tpu.memory_space<vmem>>, vector<32x64xf32>
    %1 = arith.truncf %0 : vector<32x64xf32> to vector<32x64xbf16>
    %c0_1 = arith.constant 0 : index
    %c0_2 = arith.constant 0 : index
    %2 = vector.load %arg4[%c0_1, %c0_2] : memref<64x128xbf16, #tpu.memory_space<vmem>>, vector<64x128xbf16>
    %cst = arith.constant dense<0.000000e+00> : vector<32x128xf32>
    %3 = tpu.matmul %1, %2, %cst {dimension_numbers = #tpu.dot_dimension_numbers<[1], [0], [0], [1], [0, 0, 1, 1], [], []>} : vector<32x64xbf16>, vector<64x128xbf16>, vector<32x128xf32> -> vector<32x128xf32>
    %c0_3 = arith.constant 0 : index
    %c0_4 = arith.constant 0 : index
    %4 = vector.load %arg2[%c0_3, %c0_4] : memref<32x32xf32, #tpu.memory_space<vmem>>, vector<32x32xf32>
    %5 = arith.truncf %4 : vector<32x32xf32> to vector<32x32xbf16>
    %c0_5 = arith.constant 0 : index
    %c0_6 = arith.constant 0 : index
    %6 = vector.load %arg5[%c0_5, %c0_6] : memref<32x128xbf16, #tpu.memory_space<vmem>>, vector<32x128xbf16>
    %cst_7 = arith.constant dense<0.000000e+00> : vector<32x128xf32>
    %7 = tpu.matmul %5, %6, %cst_7 {dimension_numbers = #tpu.dot_dimension_numbers<[1], [0], [0], [1], [0, 0, 1, 1], [], []>} : vector<32x32xbf16>, vector<32x128xbf16>, vector<32x128xf32> -> vector<32x128xf32>
    %8 = arith.addf %3, %7 : vector<32x128xf32>
    %c0_8 = arith.constant 0 : index
    %c0_9 = arith.constant 0 : index
    %9 = vector.load %arg3[%c0_8, %c0_9] : memref<32x64xf32, #tpu.memory_space<vmem>>, vector<32x64xf32>
    %10 = arith.truncf %9 : vector<32x64xf32> to vector<32x64xbf16>
    %c0_10 = arith.constant 0 : index
    %c0_11 = arith.constant 0 : index
    %11 = vector.load %arg6[%c0_10, %c0_11] : memref<64x128xbf16, #tpu.memory_space<vmem>>, vector<64x128xbf16>
    %cst_12 = arith.constant dense<0.000000e+00> : vector<32x128xf32>
    %12 = tpu.matmul %10, %11, %cst_12 {dimension_numbers = #tpu.dot_dimension_numbers<[1], [0], [0], [1], [0, 0, 1, 1], [], []>} : vector<32x64xbf16>, vector<64x128xbf16>, vector<32x128xf32> -> vector<32x128xf32>
    %13 = arith.addf %8, %12 : vector<32x128xf32>
    %c0_13 = arith.constant 0 : index
    %c0_14 = arith.constant 0 : index
    %14 = vector.load %arg7[%c0_13, %c0_14] : memref<32x128xf32, #tpu.memory_space<vmem>>, vector<32x128xf32>
    tpu.vector_store %arg7[%c0_13, %c0_14], %13 {strides = array<i32>} : memref<32x128xf32, #tpu.memory_space<vmem>>, vector<32x128xf32>,
    return
  }
  func.func @transform_0(%arg0: i32) -> (i32, i32) {
    %c0_i32 = arith.constant 0 : i32
    %c0_i32_0 = arith.constant 0 : i32
    return %arg0, %c0_i32 : i32, i32
  }
  func.func @transform_1(%arg0: i32) -> (i32, i32) {
    %c0_i32 = arith.constant 0 : i32
    %c0_i32_0 = arith.constant 0 : i32
    return %arg0, %c0_i32 : i32, i32
  }
  func.func @transform_2(%arg0: i32) -> (i32, i32) {
    %c0_i32 = arith.constant 0 : i32
    %c0_i32_0 = arith.constant 0 : i32
    return %arg0, %c0_i32 : i32, i32
  }
  func.func @transform_3(%arg0: i32) -> (i32, i32) {
    %c0_i32 = arith.constant 0 : i32
    %c0_i32_0 = arith.constant 0 : i32
    %c0_i32_1 = arith.constant 0 : i32
    return %c0_i32, %c0_i32_0 : i32, i32
  }
  func.func @transform_4(%arg0: i32) -> (i32, i32) {
    %c0_i32 = arith.constant 0 : i32
    %c0_i32_0 = arith.constant 0 : i32
    %c0_i32_1 = arith.constant 0 : i32
    return %c0_i32, %c0_i32_0 : i32, i32
  }
  func.func @transform_5(%arg0: i32) -> (i32, i32) {
    %c0_i32 = arith.constant 0 : i32
    %c0_i32_0 = arith.constant 0 : i32
    %c0_i32_1 = arith.constant 0 : i32
    return %c0_i32, %c0_i32_0 : i32, i32
  }
  func.func @transform_6(%arg0: i32) -> (i32, i32) {
    %c0_i32 = arith.constant 0 : i32
    %c0_i32_0 = arith.constant 0 : i32
    return %arg0, %c0_i32 : i32, i32
  }
}

</mosaic_0001>

<bundles_post_ra>
// kernel: tpu_custom_call.1
= control target key start
LH: loop header
LB: loop body
LE: loop exit
PB: predicated region body
PF: predicated region fallthrough
CT: control target
= control target key end

     0   :  { %11 = vsyncpa [#allocation3], 0  ;;  %s1400_s0 = inlined_call_operand.vmem [shape: f32[64,64], index: 0, kind: input, shape index: {}]   ;;  %s1401_s1 = inlined_call_operand.vmem [shape: f32[64,32], index: 1, kind: input, shape index: {}]   ;;  %s1402_s2 = inlined_call_operand.hbm [shape: f32[64,64], index: 2, kind: input, shape index: {}]   ;;  %s1403_s3 = inlined_call_operand.vmem [shape: bf16[64,128], index: 3, kind: input, shape index: {}]   ;;  %s1404_s4 = inlined_call_operand.hbm [shape: bf16[32,128], index: 4, kind: input, shape index: {}]   ;;  %s1405_s5 = inlined_call_operand.hbm [shape: bf16[64,128], index: 5, kind: input, shape index: {}]   ;;  %s1406_s6 = inlined_call_operand.hbm [shape: f32[64,128], index: 6, kind: output, shape index: {}]  }
   0x1   :  { %13 = vsyncpa [#allocation3 + $0x1], 0 }
   0x2   :  { %14 = vsyncpa [#allocation6], 0 }
   0x3   :  { %15 = vsyncpa [#allocation4], 0 }
   0x4   :  { %17 = vsyncpa [#allocation4 + $0x1], 0  ;;  %s1131_s21 = smov 0   ;;  %s1133_s22 = smov 0  }
   0x5   :  { %s1135_s23 = smov 0   ;;  %s1137_s24 = smov 0  }
   0x6 LB: > { %s1152_s25 = sadd.s32 4294967295, %s1084_s24   ;;  %s749_s26 = sadd.s32 4294967294, %s1084_s24   ;;  %s1084_s24 = sphi %s1137_s24, %s1426_s24   ;;  %s1080_s23 = sphi %s1135_s23, %s1425_s23   ;;  %s1076_s22 = sphi %s1133_s22, %s1424_s22   ;;  %s1072_s21 = sphi %s1131_s21, %s1423_s21  }
   0x7   : > { %p95_p0 = scmp.ne.s32.totalorder %s1076_s22, %s1072_s21  ;;  %p1407_p1 = scmp.eq.s32.totalorder %s1152_s25, 0 }
   0x8   : > { %p188_p3 = scmp.eq.s32.totalorder %s749_s26, 1  ;;  %p750_p5 = scmp.ge.s32.totalorder %s1084_s24, 1 }
   0x9   : > { %p1161_p4 = por %p1407_p1, %p95_p0  ;;  %p195_p7 = scmp.lt.s32.totalorder %s1084_s24, 3 }
   0xa   : > { %p1166_p6 = por %p188_p3, %p95_p0  ;;  %s1086_s30 = smov [#allocation5]  }
   0xb   : > { %s1410_s27 = scalar_select %p1161_p4, 1, 0 }
   0xc   : > { %s1411_s28 = scalar_select %p1166_p6, 1, 0 }
   0xd   : > { %p1171_p8 = pnand %p750_p5, %p195_p7  ;;  %s210_s7 = sshll.u32 %s1086_s30, 4  ;;  %s1175_s7 = int_to_ptr.vmem [resolvable:$true] %s210_s7 }
   0xe   : > { %s1087_s9 = smov [#allocation7]   ;;  %s928_s13 = scalar_lea.hbm %s1404_s4, 256 }
   0xf   : > { %p857_p9 = pneg %p1171_p8  ;;  %s223_s10 = sshll.u32 %s1087_s9, 4  ;;  %s1186_s10 = int_to_ptr.vmem [resolvable:$true] %s223_s10 }
  0x10   : > { %p929_p12 = scmp.ne.s32.totalorder %s1404_s4, %s928_s13  ;;  %p935_p5 = scmp.lt.u32.totalorder %s928_s13, %s1404_s4 }
  0x11   : > { %p1182_p11 = pnand %p857_p9, %p1407_p1 }
  0x13   : > { %p930_p13 = pneg %p1182_p11 }
  0x15   : > { %p931_p0 = pnand %p930_p13, %p929_p12 }
  0x17   : > { %p932_p3 = pneg %p931_p0 }
  0x19   : > { %p937_p7 = pnand %p935_p5, %p932_p3 }
  0x1b   : > { %940 = shalt.err (!%p937_p7)
}
  0x1c   : > { %s941_s18 = scalar_lea.vmem %s1175_s7, 256  ;;  %p949_p2 = scmp.lt.s32.totalorder %s1175_s7, %s1175_s7 }
  0x1d   : > { %p942_p9 = scmp.ne.s32.totalorder %s1175_s7, %s941_s18  ;;  %p950_p12 = scmp.lt.s32.totalorder %s941_s18, %s941_s18 }
  0x1f   : > { %p944_p10 = pnand %p942_p9, %p930_p13  ;;  %p951_p0 = por %p950_p12, %p949_p2 }
  0x21   : > { %p945_p1 = pneg %p944_p10 }
  0x23   : > { %p952_p6 = pnand %p951_p0, %p945_p1 }
  0x25   : > { %955 = shalt.err (!%p952_p6)
}
  0x26   : > { %s1088_s19 = smov 64   ;;  %s1089_s20 = smov 4  }
  0x27   : > { %860 = dma.hbm_to_vmem [thread:$0]  (!%p1182_p11), %s1404_s4, 256, %s1175_s7, [#allocation6], %s1088_s19, %s1088_s19, %s1089_s20  }
  0x28   : > { %s956_s12 = scalar_lea.hbm %s1405_s5, 512 }
  0x29   : > { %p957_p2 = scmp.ne.s32.totalorder %s1405_s5, %s956_s12  ;;  %p963_p10 = scmp.lt.u32.totalorder %s956_s12, %s1405_s5 }
  0x2b   : > { %p959_p1 = pnand %p957_p2, %p930_p13 }
  0x2d   : > { %p960_p6 = pneg %p959_p1 }
  0x2f   : > { %p965_p3 = pnand %p963_p10, %p960_p6 }
  0x31   : > { %968 = shalt.err (!%p965_p3)
}
  0x32   : > { %s969_s7 = scalar_lea.vmem %s1186_s10, 512  ;;  %p977_p12 = scmp.lt.s32.totalorder %s1186_s10, %s1186_s10 }
  0x33   : > { %p970_p5 = scmp.ne.s32.totalorder %s1186_s10, %s969_s7  ;;  %p978_p0 = scmp.lt.s32.totalorder %s969_s7, %s969_s7 }
  0x35   : > { %p972_p7 = pnand %p970_p5, %p930_p13  ;;  %p979_p2 = por %p978_p0, %p977_p12 }
  0x37   : > { %p973_p9 = pneg %p972_p7 }
  0x39   : > { %p980_p1 = pnand %p979_p2, %p973_p9 }
  0x3b   : > { %983 = shalt.err (!%p980_p1)
}
  0x3c   : > { %863 = dma.hbm_to_vmem [thread:$0]  (!%p1182_p11), %s1405_s5, 512, %s1186_s10, [#allocation6], %s1088_s19, %s1088_s19, %s1089_s20  }
  0x3d   : > { %s1241_s26 = sadd.s32 1, %s1084_s24   ;;  %s82_s8 = sadd.s32 1, %s1080_s23 }
  0x3e   : > { %s79_s30 = ssub.s32 %s1084_s24, %s1241_s26  ;;  %p89_p13 = scmp.ne.s32.totalorder %s1080_s23, %s1076_s22 }
  0x3f   : > { %p80_p6 = scmp.eq.s32.totalorder %s79_s30, 0  ;;  %p90_p10 = scmp.eq.s32.totalorder %s1084_s24, 0 }
  0x40   : > { %p1414_p3 = scmp.eq.s32.totalorder %s1152_s25, 1  ;;  %p874_p7 = scmp.lt.s32.totalorder %s1084_s24, 2 }
  0x41   : > { %s1257_s11 = scalar_select %p80_p6, %s1080_s23, %s82_s8  }
  0x42   : > { %p1251_p5 = por %p1414_p3, %p89_p13  ;;  %p91_p9 = por %p90_p10, %p89_p13 }
  0x43   : > { %s255_s12 = sand.u32 1, %s1080_s23   ;;  %s787_s10 = sshll.u32 %s1084_s24, 9 }
  0x44   : > { %s1415_s9 = scalar_select %p1251_p5, 1, 0 }
  0x45   : > { %s754_s13 = sshll.u32 %s255_s12, 5  ;;  %s1264_s14 = scalar_lea.hbm %s1402_s2, %s787_s10 }
  0x46   : > { %s259_s15 = scalar_lea.vmem [#allocation2], %s754_s13  ;;  %p1268_p11 = pnand %p874_p7, %p91_p9 }
  0x47   : > { %s266_s16 = sshll.u32 %s259_s15, 4  ;;  %s1272_s17 = scalar_lea.sflag [#allocation3], %s255_s12  ;;  %s1266_s16 = int_to_ptr.vmem [resolvable:$true] %s266_s16 }
  0x48   : > { %s984_s18 = scalar_lea.hbm %s1264_s14, 512  ;;  %p986_p0 = pneg %p1268_p11 }
  0x49   : > { %p985_p12 = scmp.ne.s32.totalorder %s1264_s14, %s984_s18  ;;  %s989_s13 = scalar_lea.hbm %s1402_s2, 1024 }
  0x4a   : > { %p990_p13 = scmp.lt.u32.totalorder %s1264_s14, %s1402_s2  ;;  %p991_p6 = scmp.lt.u32.totalorder %s989_s13, %s984_s18 }
  0x4b   : > { %p987_p2 = pnand %p986_p0, %p985_p12  ;;  %p993_p3 = scmp.lt.u32.totalorder %s984_s18, %s1264_s14 }
  0x4c   : > { %p992_p10 = por %p991_p6, %p990_p13 }
  0x4d   : > { %p988_p1 = pneg %p987_p2 }
  0x4e   : > { %p994_p7 = por %p993_p3, %p992_p10 }
  0x50   : > { %p995_p9 = pnand %p994_p7, %p988_p1 }
  0x52   : > { %998 = shalt.err (!%p995_p9)
}
  0x53   : > { %s999_s12 = scalar_lea.vmem %s1266_s16, 512  ;;  %s1090_s20 = smov [#allocation2]  }
  0x54   : > { %p1000_p12 = scmp.ne.s32.totalorder %s1266_s16, %s999_s12  ;;  %s1004_s15 = sshll.u32 %s1090_s20, 4  ;;  %s1005_s15 = int_to_ptr.vmem [resolvable:$false] %s1004_s15 }
  0x55   : > { %s1006_s8 = scalar_lea.vmem %s1005_s15, 1024  ;;  %p1007_p4 = scmp.lt.s32.totalorder %s1266_s16, %s1005_s15 }
  0x56   : > { %p1002_p2 = pnand %p1000_p12, %p986_p0  ;;  %p1008_p13 = scmp.lt.s32.totalorder %s1006_s8, %s999_s12 }
  0x58   : > { %p1003_p5 = pneg %p1002_p2  ;;  %p1009_p6 = por %p1008_p13, %p1007_p4 }
  0x5a   : > { %p1010_p10 = pnand %p1009_p6, %p1003_p5 }
  0x5c   : > { %1013 = shalt.err (!%p1010_p10)
}
  0x5d   : > { %s1091_s18 = smov 128   ;;  %s1092_s30 = smov 8  }
  0x5e   : > { %867 = dma.hbm_to_vmem [thread:$0]  (!%p1268_p11), %s1264_s14, 512, %s1266_s16, %s1272_s17, %s1091_s18, %s1091_s18, %s1092_s30  }
  0x5f   : > { %278 = sbr.rel (%p1171_p8) target bundleno = 364 (0x16c), region = 44  ;;  %s1303_s13 = sand.u32 (!%p1171_p8), 1, %s1076_s22  }
  0x60   : > { %s758_s10 = sshll.u32 (!%p1171_p8), %s1303_s13, 5  ;;  %s281_s19 = scalar_lea.sflag (!%p1171_p8), [#allocation3], %s1303_s13 }
  0x61   : > { %s1309_s12 = scalar_lea.vmem (!%p1171_p8), [#allocation2], %s758_s10  ;;  %p1417_p4 = scmp.ne.s32.totalorder (!%p1171_p8), %s1410_s27, 0 }
  0x66   : > { %1059 = dma.done.wait (%p1417_p4), %s281_s19, 512  }
  0x67   : > { %1061 = vsyncadd (%p1417_p4), %s281_s19, 4294966784  ;;  %p1418_p5 = scmp.eq.s32.totalorder %s1152_s25, 0 }
  0x69   : > { %1063 = dma.done.wait (%p1418_p5), [#allocation6], 768   ;;  %p1419_p8 = pmov %p1418_p5 }
  0x6a   : > { %s762_s29 = sshll.u32 %s1152_s25, 2  ;;  %v918_v0 = vld [vmem:[#allocation5] sm:$0xff]   ;;  %v920_v2 = vld [vmem:[#allocation5 + $0x8] sm:$0xff]   ;;  %vm382_vm0 = vcmask 261120   ;;  %v922_v10 = vld [vmem:[%s1403_s3 + $0x10] sm:$0xff]   ;;  %vm462_vm1 = vcmask 523264  }
  0x6b   : > { %1065 = vsyncadd (%p1419_p8), [#allocation6], 4294966528  ;;  %p332_p11 = scmp.lt.s32.totalorder %s762_s29, 7  ;;  %v919_v1 = vld [vmem:[%s1403_s3] sm:$0xff]   ;;  %805 = vmatprep.subr.bf16.mxu0 %v918_v0  ;;  %v921_v3 = vld [vmem:[%s1403_s3 + $0x8] sm:$0xff]   ;;  %s788_s20 = sshll.u32 %s1152_s25, 9 }
  0x6c   : > { %813 = vmatprep.subr.bf16.mxu1 %v919_v1  ;;  %806 = vmatpush3.bf16.msra.mxu0 %v918_v0  ;;  %v923_v11 = vld [vmem:[#allocation7] sm:$0xff]   ;;  %v924_v12 = vld [vmem:[%s1403_s3 + $0x18] sm:$0xff]   ;;  %v926_v19 = vld [vmem:[#allocation7 + $0x10] sm:$0xff]   ;;  %s620_s25 = scalar_lea.sflag [#allocation4], %s1303_s13  ;;  %p1420_p1 = scmp.ne.s32.totalorder %s1415_s9, 0 }
  0x6d   : > { %s1428_s29 = smov (!%p332_p11, %s762_s29), 7  ;;  %814 = vmatpush3.bf16.msra.mxu1 %v919_v1  ;;  %807 = vmatprep.subr.bf16.mxu0 %v920_v2  ;;  %v925_v13 = vld [vmem:[#allocation7 + $0x8] sm:$0xff]   ;;  %v518_v20 = vld [vmem:[%s1309_s12] sm:$0xff]  ;;  %v519_v21 = vld [vmem:[%s1309_s12 + $0x8] sm:$0xff]  ;;  %s1093_s18 = smov [#allocation8]  }
  0x6e   : > { %s763_s14 = sshll.u32 %s1428_s29, 3  ;;  %815 = vmatprep.subr.bf16.mxu1 %v921_v3  ;;  %v522_v22 = vpack.c.bf16 %v519_v21, %v518_v20  ;;  %v927_v24 = vld [vmem:[#allocation7 + $0x18] sm:$0xff]   ;;  %v520_v25 = vld [vmem:[%s1309_s12 + $0x10] sm:$0xff]  ;;  %v521_v26 = vld [vmem:[%s1309_s12 + $0x18] sm:$0xff]  ;;  %s330_s12 = scalar_lea.vmem [#allocation8], %s758_s10 }
  0x6f   : > { %s341_s27 = scalar_lea.vmem %s1401_s1, %s763_s14  ;;  %s335_s16 = scalar_lea.vmem %s1400_s0, %s763_s14  ;;  %v523_v27 = vpack.c.bf16 %v521_v26, %v520_v25 }
  0x70   : > { %v360_v4 = vld [vmem:[%s341_s27] sm:$0xff]  ;;  %v361_v5 = vld [vmem:[%s341_s27 + $0x8] sm:$0xff]  ;;  %v362_v6 = vld [vmem:[%s341_s27 + $0x10] sm:$0xff]  ;;  %808 = vmatpush3.bf16.msra.mxu0 %v920_v2  ;;  %s633_s14 = sshll.u32 %s330_s12, 4  ;;  %s1356_s10 = scalar_lea.hbm %s1406_s6, %s788_s20  ;;  %s1351_s14 = int_to_ptr.vmem [resolvable:$true] %s633_s14 }
  0x71   : > { %v364_v7 = vpack.c.bf16 %v361_v5, %v360_v4  ;;  %v363_v8 = vld [vmem:[%s341_s27 + $0x18] sm:$0xff]  ;;  %816 = vmatpush3.bf16.msra.mxu1 %v921_v3  ;;  %825 = vmatprep.subr.bf16.mxu0 %v923_v11  ;;  %v346_v14 = vld [vmem:[%s335_s16] sm:$0xff]  ;;  %v347_v15 = vld [vmem:[%s335_s16 + $0x8] sm:$0xff]  ;;  %s1014_s8 = scalar_lea.vmem %s1351_s14, 512  ;;  %s1018_s30 = sshll.u32 %s1093_s18, 4  ;;  %s1019_s30 = int_to_ptr.vmem [resolvable:$false] %s1018_s30 }
  0x72   : > { %v365_v9 = vpack.c.bf16 %v363_v8, %v362_v6  ;;  %817 = vmatprep.subr.bf16.mxu1 %v922_v10  ;;  %v350_v16 = vpack.c.bf16 %v347_v15, %v346_v14  ;;  %v348_v17 = vld [vmem:[%s335_s16 + $0x10] sm:$0xff]  ;;  %v349_v18 = vld [vmem:[%s335_s16 + $0x18] sm:$0xff]  ;;  %p1015_p0 = scmp.ne.s32.totalorder %s1351_s14, %s1014_s8  ;;  %s1020_s19 = scalar_lea.vmem %s1019_s30, 1024 }
  0x73   : > { %809 = vmatprep.mubr.msk.bf16.mxu0 %vm382_vm0, %v364_v7  ;;  %v351_v23 = vpack.c.bf16 %v349_v18, %v348_v17  ;;  %p1021_p9 = scmp.lt.s32.totalorder %s1351_s14, %s1019_s30  ;;  %p1022_p12 = scmp.lt.s32.totalorder %s1020_s19, %s1014_s8 }
  0x74   : > { %810 = vmatmul.mubr.msk.bf16.vlgmr.msra.gmra.mrb[0].mxu0 %vm382_vm0, %v365_v9  ;;  %821 = vmatprep.mubr.msk.bf16.mxu1 %vm462_vm1, %v350_v16  ;;  %p1016_p3 = pnand %p1015_p0, %p1420_p1 }
  0x75   : > { %826 = vmatpush3.bf16.msra.mxu0 %v923_v11  ;;  %818 = vmatpush3.bf16.msra.mxu1 %v922_v10  ;;  %p1023_p2 = por %p1022_p12, %p1021_p9 }
  0x76   : > { %827 = vmatprep.subr.bf16.mxu0 %v925_v13  ;;  %819 = vmatprep.subr.bf16.mxu1 %v924_v12  ;;  %p1017_p7 = pneg %p1016_p3 }
  0x77   : > { %833 = vmatprep.mubr.msk.bf16.mxu0 %vm462_vm1, %v522_v22 }
  0x78   : > { %p1024_p13 = pnand %p1023_p2, %p1017_p7 }
  0x79   : > { %828 = vmatpush3.bf16.msra.mxu0 %v925_v13  ;;  %820 = vmatpush3.bf16.msra.mxu1 %v924_v12 }
  0x7a   : > { %829 = vmatprep.subr.bf16.mxu0 %v926_v19 }
  0x7c   : > { %822 = vmatmul.mubr.msk.bf16.vlgmr.msra.gmra.mrb[0].mxu1 %vm462_vm1, %v351_v23 }
  0x7d   : > { %830 = vmatpush3.bf16.msra.mxu0 %v926_v19 }
  0x7e   : > { %831 = vmatprep.subr.bf16.mxu0 %v927_v24 }
  0x81   : > { %832 = vmatpush3.bf16.msra.mxu0 %v927_v24 }
  0x84   : > { %834 = vmatmul.mubr.msk.bf16.vlgmr.msra.gmra.mrb[4].mxu0 %vm462_vm1, %v523_v27 }
 0x147   : > { %v811_v28 = vpop.f32.mrb[0].mxu0 }
 0x148   : > { %v423_v29 = vpop.f32.mrb[1].mxu0 }
 0x149   : > { %v812_v30 = vpop.f32.mrb[2].mxu0 }
 0x14a   : > { %v426_v31 = vpop.f32.mrb[3].mxu0 }
 0x14f   : > { %v823_v32 = vpop.f32.mrb[0].mxu1 }
 0x150   : > { %v512_v33 = vadd.f32 %v823_v32, %v811_v28  ;;  %v503_v34 = vpop.f32.mrb[1].mxu1 }
 0x151   : > { %v504_v35 = vadd.f32 %v503_v34, %v423_v29  ;;  %v824_v36 = vpop.f32.mrb[2].mxu1 }
 0x152   : > { %v515_v37 = vadd.f32 %v824_v36, %v812_v30  ;;  %v506_v38 = vpop.f32.mrb[3].mxu1 }
 0x153   : > { %v507_v39 = vadd.f32 %v506_v38, %v426_v31 }
 0x157   : > { %v835_v40 = vpop.f32.mrb[4].mxu0 }
 0x158   : > { %v613_v41 = vadd.f32 %v835_v40, %v512_v33  ;;  %v596_v42 = vpop.f32.mrb[5].mxu0 }
 0x159   : > { %v611_v43 = vadd.f32 %v596_v42, %v504_v35  ;;  %v836_v44 = vpop.f32.mrb[6].mxu0 }
 0x15a   : > { %617 = vst [vmem:[%s330_s12 + $0x10] sm:$0xff] %v613_v41  ;;  %v614_v45 = vadd.f32 %v836_v44, %v515_v37  ;;  %v599_v46 = vpop.f32.mrb[7].mxu0 }
 0x15b   : > { %615 = vst [vmem:[%s330_s12] sm:$0xff] %v611_v43  ;;  %v612_v47 = vadd.f32 %v599_v46, %v507_v39 }
 0x15c   : > { %618 = vst [vmem:[%s330_s12 + $0x18] sm:$0xff] %v614_v45 }
 0x15d   : > { %616 = vst [vmem:[%s330_s12 + $0x8] sm:$0xff] %v612_v47 }
 0x15e   : > { %1027 = shalt.err (!%p1024_p13)
}
 0x15f   : > { %s1028_s29 = scalar_lea.hbm %s1356_s10, 512  ;;  %s1032_s17 = scalar_lea.hbm %s1406_s6, 1024 }
 0x160   : > { %p1029_p6 = scmp.ne.s32.totalorder %s1356_s10, %s1028_s29  ;;  %p1033_p5 = scmp.lt.u32.totalorder %s1356_s10, %s1406_s6 }
 0x161   : > { %p1034_p8 = scmp.lt.u32.totalorder %s1032_s17, %s1028_s29  ;;  %p1036_p0 = scmp.lt.u32.totalorder %s1028_s29, %s1356_s10 }
 0x162   : > { %p1030_p10 = pnand %p1029_p6, %p1420_p1 }
 0x163   : > { %p1035_p11 = por %p1034_p8, %p1033_p5 }
 0x164   : > { %p1031_p4 = pneg %p1030_p10 }
 0x165   : > { %p1037_p3 = por %p1036_p0, %p1035_p11 }
 0x167   : > { %p1038_p7 = pnand %p1037_p3, %p1031_p4 }
 0x169   : > { %1041 = shalt.err (!%p1038_p7)
}
 0x16a   : > { %s1094_s27 = smov 128   ;;  %s1095_s15 = smov 8  }
 0x16b   : > { %855 = dma.vmem_to_hbm [thread:$0]  (%p1420_p1), %s1351_s14, 512, %s1356_s10, %s620_s25, %s1094_s27, %s1094_s27, %s1095_s15  }
 0x16c PF: > { %s648_s8 = sand.u32 1, %s1072_s21   ;;  %p1421_p9 = scmp.ne.s32.totalorder %s1411_s28, 0 }
 0x16d   : > { %p1422_p12 = scmp.ge.s32.totalorder %s1084_s24, 2  ;;  %s649_s18 = scalar_lea.sflag [#allocation4], %s648_s8 }
 0x16f   : > { %p869_p2 = pnand %p1422_p12, %p1421_p9 }
 0x171   : > { %1067 = dma.done.wait (!%p869_p2), %s649_s18, 512  }
 0x172   : > { %1069 = vsyncadd (!%p869_p2), %s649_s18, 4294966784  ;;  %p20_p13 = scmp.ge.s32.totalorder %s1241_s26, 4   ;;  %s1423_s21 = smov %s1076_s22 }
 0x173   : > { %s1424_s22 = smov %s1080_s23  ;;  %s1425_s23 = smov %s1257_s11 }
 0x174   : > { %s1426_s24 = smov %s1241_s26  ;;  %22 = sbr.rel (!%p20_p13) target bundleno = 6 (0x6), region = 103 }
 0x17b   :  { %654 = vsyncpa [#allocation3], 1 }
 0x17c   :  { %656 = vsyncpa [#allocation3 + $0x1], 1 }
 0x17d   :  { %657 = vsyncpa [#allocation6], 1 }
 0x17e   :  { %658 = vsyncpa [#allocation4], 1 }
 0x17f   :  { %660 = vsyncpa [#allocation4 + $0x1], 1 }

</bundles_post_ra>
